<compile_context>
chip_gen: v6e
topology: v6e:2x2x1
jax: 0.10.0
libtpu: 0.0.40
codegen_flags: <defaults>
</compile_context>

<pallas_src>
import functools

import jax
import jax.numpy as jnp
from jax.experimental import pallas as pl
from jax.experimental.pallas import tpu as pltpu


_MAX_BATCH_PER_BLOCK = 8   # sanity cap on the fused-path batch tile


# --------------------------------------------------------------------------------------
# Kernels
# --------------------------------------------------------------------------------------

def _scse_fused_kernel(x_ref, w1t_ref, b1r_ref, w2t_ref, b2r_ref, ws_ref, bs_ref, o_ref):
    """Single-pass SCSE on a (Bt, C, L) block."""
    x = x_ref[...]                                   # (Bt, C, L) f32
    inv_l = 1.0 / x.shape[2]

    # ---- cSE gate: global average pool + tiny 2-layer MLP, batched over the block ----
    pooled = jnp.sum(x, axis=2) * inv_l              # (Bt, C)
    z1 = jnp.dot(pooled, w1t_ref[...], preferred_element_type=jnp.float32) + b1r_ref[...]
    z1 = jnp.maximum(z1, 0.0)                        # (Bt, Cr)
    z2 = jnp.dot(z1, w2t_ref[...], preferred_element_type=jnp.float32) + b2r_ref[...]
    c_gate = jax.nn.sigmoid(z2)[:, :, None]          # (Bt, C, 1)

    # ---- sSE gate: VPU broadcast-multiply + sublane reduce (no M=1 MXU matmul) ----
    s = jnp.sum(ws_ref[...][None, :, :] * x, axis=1, keepdims=True) + bs_ref[0, 0]
    s_gate = jax.nn.sigmoid(s)                       # (Bt, 1, L)

    # ---- fused combine: x * (cSE + sSE) saves one full (Bt, C, L) multiply ----
    o_ref[...] = x * (c_gate + s_gate)


def _scse_pool_gate_kernel(inv_l, x_ref, w1_ref, b1_ref, w2_ref, b2_ref, gate_ref, sum_ref):
    """Pass 1 of the L-tiled path: accumulate channel sums over L, then the cSE MLP."""
    lt = pl.program_id(1)

    @pl.when(lt == 0)
    def _init():
        sum_ref[...] = jnp.zeros_like(sum_ref)

    sum_ref[...] += jnp.sum(x_ref[0], axis=1, keepdims=True)                     # (C, 1)

    @pl.when(lt == pl.num_programs(1) - 1)
    def _finalize():
        pooled = sum_ref[...] * inv_l                                            # (C, 1)
        z1 = jnp.dot(w1_ref[...], pooled, preferred_element_type=jnp.float32) + b1_ref[...]
        z1 = jnp.maximum(z1, 0.0)                                                # (Cr, 1)
        z2 = jnp.dot(w2_ref[...], z1, preferred_element_type=jnp.float32) + b2_ref[...]
        gate_ref[0] = jax.nn.sigmoid(z2)                                         # (C, 1)


def _scse_apply_kernel(x_ref, gate_ref, ws_ref, bs_ref, o_ref):
    """Pass 2 of the L-tiled path: sSE gate per (C, Lt) tile + fused combine."""
    x = x_ref[0]                                                                 # (C, Lt)
    s = jnp.sum(ws_ref[...] * x, axis=0, keepdims=True) + bs_ref[0, 0]           # (1, Lt)
    s_gate = jax.nn.sigmoid(s)
    o_ref[0] = x * (gate_ref[0] + s_gate)                                        # (C,1)+(1,Lt)


# --------------------------------------------------------------------------------------
# VMEM policy + tiling helpers
# --------------------------------------------------------------------------------------

def _cdiv(a, b):
    return -(-a // b)


def _vmem_policy():
    """(block_bytes_budget, vmem_limit_cap) derived from the chip generation."""
    vmem_cap = 128 << 20
    try:
        vmem_cap = int(getattr(pltpu.get_tpu_info(), "vmem_capacity_bytes", vmem_cap))
    except Exception:
        pass
    if vmem_cap <= (64 << 20):            # v7x-class: 64 MiB VMEM per TensorCore
        return 10 << 20, 48 << 20         # never request the full 64 MiB
    return 24 << 20, 100 << 20            # v5e / v6e: 128 MiB physical VMEM


def _vmem_limit(block_bytes, cap):
    # in + out double-buffered (~4x the block) + weights / compiler headroom.
    return int(min(max(32 << 20, 4 * block_bytes + (4 << 20)), cap))


def _choose_batch_tile(B, row_bytes, budget, target_steps=4):
    """Batch tile for the fused path: fits the budget, divides B, and keeps the grid at
    >= 2 (ideally `target_steps`) steps so pipelining / both v7x cores are engaged."""
    if row_bytes > budget:
        return 0
    bt = int(min(B, _MAX_BATCH_PER_BLOCK, budget // row_bytes))
    if B >= 2:
        bt = min(bt, max(1, B // min(target_steps, B)))
    while B % bt:
        bt -= 1
    return bt


def _choose_len_tile(L, bytes_per_len, budget):
    """Lane-dense (multiple of 128), evenly split tile length for the two-pass path.

    Returns (tile_len, num_tiles, padded_len)."""
    lt_max = max(128, (budget // max(bytes_per_len, 1)) // 128 * 128)
    n_l = _cdiv(L, lt_max)
    lt = _cdiv(_cdiv(L, n_l), 128) * 128          # even-ish, 128-aligned tiles
    n_l = _cdiv(L, lt)
    return lt, n_l, lt * n_l


# --------------------------------------------------------------------------------------
# Wrapper
# --------------------------------------------------------------------------------------

def scse_attention(x, params, *, block_bytes_budget=None):
    """SCSE attention forward. x: (B, C, L) float32, params from init_scse_params."""
    B, C, L = x.shape
    itemsize = x.dtype.itemsize
    w1, b1, w2, b2 = params["w1"], params["b1"], params["w2"], params["b2"]
    Cr = w1.shape[0]
    ws_col = params["ws"].reshape(C, 1)          # Conv1d(C,1,1) weight (1, C) -> (C, 1)
    bs = params["bs"].reshape(1, 1)              # scalar bias -> SMEM

    budget, vmem_cap = _vmem_policy()
    if block_bytes_budget is not None:
        budget = int(block_bytes_budget)

    weight_bytes = sum(int(p.size) * itemsize for p in (w1, b1, w2, b2, ws_col, bs))
    cost = pl.CostEstimate(
        flops=int(5 * B * C * L + 4 * B * C * Cr),
        transcendentals=int(B * (L + C)),
        bytes_accessed=int(2 * B * C * L * itemsize + weight_bytes),
    )

    smem_spec = pl.BlockSpec(memory_space=pltpu.MemorySpace.SMEM)
    row_bytes = C * L * itemsize
    Bt = _choose_batch_tile(B, row_bytes, budget)

    if Bt:
        # ------------- fused single-pass path: (Bt, C, L) blocks, grid over batch -------
        w1t = w1.T                    # (C, Cr) — row orientation for batched MLP
        b1r = b1.reshape(1, Cr)
        w2t = w2.T                    # (Cr, C)
        b2r = b2.reshape(1, C)
        full = lambda shape: pl.BlockSpec(shape, lambda b: (0, 0))
        return pl.pallas_call(
            _scse_fused_kernel,
            out_shape=jax.ShapeDtypeStruct((B, C, L), x.dtype),
            grid_spec=pltpu.PrefetchScalarGridSpec(
                num_scalar_prefetch=0,
                grid=(B // Bt,),
                in_specs=[
                    pl.BlockSpec((Bt, C, L), lambda b: (b, 0, 0)),   # x
                    full((C, Cr)),   # w1ᵀ
                    full((1, Cr)),   # b1 row
                    full((Cr, C)),   # w2ᵀ
                    full((1, C)),    # b2 row
                    full((C, 1)),    # ws (column)
                    smem_spec,       # bs scalar
                ],
                out_specs=pl.BlockSpec((Bt, C, L), lambda b: (b, 0, 0)),
            ),
            compiler_params=pltpu.CompilerParams(
                dimension_semantics=("parallel",),
                vmem_limit_bytes=_vmem_limit(Bt * row_bytes, vmem_cap)),
            cost_estimate=cost,
        )(x, w1t, b1r, w2t, b2r, ws_col, bs)

    # -------------- two-pass L-tiled path: a full-length row blows the VMEM budget -------
    Lt, n_l, L_pad = _choose_len_tile(L, C * itemsize, budget)
    x_work = x if L_pad == L else jnp.pad(x, ((0, 0), (0, 0), (0, L_pad - L)))
    blk_bytes = C * Lt * itemsize
    vlim = _vmem_limit(blk_bytes, vmem_cap)
    fullw = lambda shape: pl.BlockSpec(shape, lambda b, l: (0, 0))

    # Pass 1: per-channel sum accumulated across the 'arbitrary' L axis + cSE gate.
    # (Zero padding adds nothing to the sum; 1/L uses the true length.)
    c_gate = pl.pallas_call(
        functools.partial(_scse_pool_gate_kernel, 1.0 / L),
        out_shape=jax.ShapeDtypeStruct((B, C, 1), jnp.float32),
        grid_spec=pltpu.PrefetchScalarGridSpec(
            num_scalar_prefetch=0,
            grid=(B, n_l),
            in_specs=[
                pl.BlockSpec((1, C, Lt), lambda b, l: (b, 0, l)),    # x tile
                fullw((Cr, C)), fullw((Cr, 1)), fullw((C, Cr)), fullw((C, 1)),
            ],
            out_specs=pl.BlockSpec((1, C, 1), lambda b, l: (b, 0, 0)),
            scratch_shapes=[pltpu.VMEM((C, 1), jnp.float32)],
        ),
        compiler_params=pltpu.CompilerParams(
            dimension_semantics=("parallel", "arbitrary"),
            vmem_limit_bytes=vlim),
        cost_estimate=pl.CostEstimate(
            flops=int(B * C * L_pad), transcendentals=int(B * C),
            bytes_accessed=int(B * C * L_pad * itemsize + weight_bytes)),
    )(x_work, w1, b1, w2, b2)

    # Pass 2: sSE gate per lane-dense (C, Lt) tile + fused combine (streams x once more).
    # TODO(synk): fold a batch sub-tile into the pass-2 block when C*Lt is small.
    out = pl.pallas_call(
        _scse_apply_kernel,
        out_shape=jax.ShapeDtypeStruct((B, C, L_pad), x.dtype),
        grid_spec=pltpu.PrefetchScalarGridSpec(
            num_scalar_prefetch=0,
            grid=(B, n_l),
            in_specs=[
                pl.BlockSpec((1, C, Lt), lambda b, l: (b, 0, l)),    # x tile
                pl.BlockSpec((1, C, 1), lambda b, l: (b, 0, 0)),     # cSE gate (per b)
                fullw((C, 1)),                                        # ws column
                smem_spec,                                            # bs scalar
            ],
            out_specs=pl.BlockSpec((1, C, Lt), lambda b, l: (b, 0, l)),
        ),
        compiler_params=pltpu.CompilerParams(
            dimension_semantics=("parallel", "parallel"),
            vmem_limit_bytes=vlim),
        cost_estimate=cost,
    )(x_work, c_gate, ws_col, bs)
    return out if L_pad == L else out[:, :, :L]


def attention(x, name=None, params=None):
    """Mirror of the PyTorch `Attention` wrapper."""
    if name is None:
        return x  # nn.Identity
    elif name == "scse":
        return scse_attention(x, params)
    else:
        raise ValueError("Attention {} is not implemented".format(name))


# --------------------------------------------------------------------------------------
# Params + reference
# --------------------------------------------------------------------------------------

def init_scse_params(key, C_in, reduction):
    """Deterministic synthetic parameters with the shapes Conv1d(..., 1, 1) implies."""
    Cr = C_in // reduction
    ks = jax.random.split(key, 6)
    scale = 0.1
    return {
        # Conv1d(C_in, Cr, 1): weight (Cr, C_in, 1) -> stored as (Cr, C_in)
        "w1": scale * jax.random.normal(ks[0], (Cr, C_in), jnp.float32),
        "b1": scale * jax.random.normal(ks[1], (Cr, 1), jnp.float32),
        # Conv1d(Cr, C_in, 1): weight (C_in, Cr, 1) -> stored as (C_in, Cr)
        "w2": scale * jax.random.normal(ks[2], (C_in, Cr), jnp.float32),
        "b2": scale * jax.random.normal(ks[3], (C_in, 1), jnp.float32),
        # Conv1d(C_in, 1, 1): weight (1, C_in, 1) -> stored as (1, C_in)
        "ws": scale * jax.random.normal(ks[4], (1, C_in), jnp.float32),
        "bs": scale * jax.random.normal(ks[5], (1, 1), jnp.float32),
    }


def _reference_scse(x, p):
    """Pure-JAX reference for correctness checking."""
    pooled = jnp.mean(x, axis=2, keepdims=True)                                  # (B, C, 1)
    z1 = jax.nn.relu(jnp.einsum("rc,bcl->brl", p["w1"], pooled) + p["b1"][None])
    c_gate = jax.nn.sigmoid(jnp.einsum("cr,brl->bcl", p["w2"], z1) + p["b2"][None])
    s_gate = jax.nn.sigmoid(jnp.einsum("oc,bcl->bol", p["ws"], x) + p["bs"][None])
    return x * c_gate + x * s_gate


# --------------------------------------------------------------------------------------
# Self-test
# --------------------------------------------------------------------------------------

if __name__ == "__main__":
    reduction = 4

    # Small shapes consistent with the module (C divisible by reduction, L lane-aligned).
    B, C, L = 2, 32, 128
    key = jax.random.PRNGKey(0)
    kx, kp = jax.random.split(key)
    x = jax.random.normal(kx, (B, C, L), jnp.float32)
    params = init_scse_params(kp, C, reduction)

    out = attention(x, name="scse", params=params)        # fused single-pass path (grid=2)
    out = jax.block_until_ready(out)
    ref = _reference_scse(x, params)
    assert out.shape == (B, C, L)
    assert jnp.allclose(out, ref, atol=1e-5, rtol=1e-5), "fused path mismatch vs reference"

    # Identity passthrough (name=None).
    assert attention(x, name=None) is x

    # Exercise the two-pass L-tiled path by forcing a tiny budget on a longer input.
    B2, C2, L2 = 2, 32, 256
    k2x, k2p = jax.random.split(jax.random.PRNGKey(1))
    x2 = jax.random.normal(k2x, (B2, C2, L2), jnp.float32)
    params2 = init_scse_params(k2p, C2, reduction)
    out2 = jax.block_until_ready(
        scse_attention(x2, params2, block_bytes_budget=C2 * 128 * 4))   # forces Lt=128
    ref2 = _reference_scse(x2, params2)
    assert jnp.allclose(out2, ref2, atol=1e-5, rtol=1e-5), "tiled path mismatch vs reference"

    # Two-pass path with L not a multiple of 128 (padded once in the wrapper).
    B3, C3, L3 = 2, 32, 200
    k3x, k3p = jax.random.split(jax.random.PRNGKey(2))
    x3 = jax.random.normal(k3x, (B3, C3, L3), jnp.float32)
    params3 = init_scse_params(k3p, C3, reduction)
    out3 = jax.block_until_ready(
        scse_attention(x3, params3, block_bytes_budget=C3 * 128 * 4))
    ref3 = _reference_scse(x3, params3)
    assert out3.shape == (B3, C3, L3)
    assert jnp.allclose(out3, ref3, atol=1e-5, rtol=1e-5), "padded tiled path mismatch"

    print("KERNEL_OK")
</pallas_src>

<mosaic_0001>
module attributes {stable_mosaic.version = 11 : i64} {
  func.func @_scse_fused_kernel(%arg0: i32, %arg1: memref<1x32x128xf32, #tpu.memory_space<vmem>>, %arg2: memref<32x8xf32, #tpu.memory_space<vmem>>, %arg3: memref<1x8xf32, #tpu.memory_space<vmem>>, %arg4: memref<8x32xf32, #tpu.memory_space<vmem>>, %arg5: memref<1x32xf32, #tpu.memory_space<vmem>>, %arg6: memref<32x1xf32, #tpu.memory_space<vmem>>, %arg7: memref<1x1xf32, #tpu.memory_space<smem>>, %arg8: memref<1x32x128xf32, #tpu.memory_space<vmem>>) attributes {dimension_semantics = [#tpu.dimension_semantics<parallel>], iteration_bounds = array<i64: 2>, scalar_prefetch = 0 : i64, scratch_operands = 0 : i64, tpu.core_type = #tpu.core_type<tc>, window_params = [{transform_indices = @transform_0, window_bounds = array<i64: 1, 32, 128>}, {pipeline_mode = #tpu.pipeline_mode<synchronous>, transform_indices = @transform_1, window_bounds = array<i64: 32, 8>}, {pipeline_mode = #tpu.pipeline_mode<synchronous>, transform_indices = @transform_2, window_bounds = array<i64: 1, 8>}, {pipeline_mode = #tpu.pipeline_mode<synchronous>, transform_indices = @transform_3, window_bounds = array<i64: 8, 32>}, {pipeline_mode = #tpu.pipeline_mode<synchronous>, transform_indices = @transform_4, window_bounds = array<i64: 1, 32>}, {pipeline_mode = #tpu.pipeline_mode<synchronous>, transform_indices = @transform_5, window_bounds = array<i64: 32, 1>}, {transform_indices = @transform_6, window_bounds = array<i64: 1, 1>}, {transform_indices = @transform_7, window_bounds = array<i64: 1, 32, 128>}]} {
    %c0 = arith.constant 0 : index
    %c0_0 = arith.constant 0 : index
    %c0_1 = arith.constant 0 : index
    %0 = vector.load %arg1[%c0, %c0_0, %c0_1] : memref<1x32x128xf32, #tpu.memory_space<vmem>>, vector<1x32x128xf32>
    %cst = arith.constant dense<0.000000e+00> : vector<1x32xf32>
    %1 = vector.multi_reduction <add>, %0, %cst [2] : vector<1x32x128xf32> to vector<1x32xf32>
    %cst_2 = arith.constant 7.812500e-03 : f32
    %2 = vector.broadcast %cst_2 : f32 to vector<1x32xf32>
    %3 = arith.mulf %1, %2 : vector<1x32xf32>
    %c0_3 = arith.constant 0 : index
    %c0_4 = arith.constant 0 : index
    %4 = vector.load %arg2[%c0_3, %c0_4] : memref<32x8xf32, #tpu.memory_space<vmem>>, vector<32x8xf32>
    %cst_5 = arith.constant dense<0.000000e+00> : vector<1x8xf32>
    %5 = tpu.matmul %3, %4, %cst_5 {dimension_numbers = #tpu.dot_dimension_numbers<[1], [0], [0], [1], [0, 0, 1, 1], [], []>} : vector<1x32xf32>, vector<32x8xf32>, vector<1x8xf32> -> vector<1x8xf32>
    %c0_6 = arith.constant 0 : index
    %c0_7 = arith.constant 0 : index
    %6 = vector.load %arg3[%c0_6, %c0_7] : memref<1x8xf32, #tpu.memory_space<vmem>>, vector<1x8xf32>
    %7 = arith.addf %5, %6 : vector<1x8xf32>
    %cst_8 = arith.constant 0.000000e+00 : f32
    %8 = vector.broadcast %cst_8 : f32 to vector<1x8xf32>
    %9 = arith.maximumf %7, %8 : vector<1x8xf32>
    %c0_9 = arith.constant 0 : index
    %c0_10 = arith.constant 0 : index
    %10 = vector.load %arg4[%c0_9, %c0_10] : memref<8x32xf32, #tpu.memory_space<vmem>>, vector<8x32xf32>
    %cst_11 = arith.constant dense<0.000000e+00> : vector<1x32xf32>
    %11 = tpu.matmul %9, %10, %cst_11 {dimension_numbers = #tpu.dot_dimension_numbers<[1], [0], [0], [1], [0, 0, 1, 1], [], []>} : vector<1x8xf32>, vector<8x32xf32>, vector<1x32xf32> -> vector<1x32xf32>
    %c0_12 = arith.constant 0 : index
    %c0_13 = arith.constant 0 : index
    %12 = vector.load %arg5[%c0_12, %c0_13] : memref<1x32xf32, #tpu.memory_space<vmem>>, vector<1x32xf32>
    %13 = arith.addf %11, %12 : vector<1x32xf32>
    %14 = arith.negf %13 : vector<1x32xf32>
    %15 = math.exp %14 : vector<1x32xf32>
    %cst_14 = arith.constant 1.000000e+00 : f32
    %16 = vector.broadcast %cst_14 : f32 to vector<1x32xf32>
    %17 = arith.addf %16, %15 : vector<1x32xf32>
    %18 = arith.divf %16, %17 : vector<1x32xf32>
    %19 = vector.shape_cast %18 : vector<1x32xf32> to vector<1x32x1xf32>
    %c0_15 = arith.constant 0 : index
    %c0_16 = arith.constant 0 : index
    %20 = vector.load %arg6[%c0_15, %c0_16] : memref<32x1xf32, #tpu.memory_space<vmem>>, vector<32x1xf32>
    %21 = vector.shape_cast %20 : vector<32x1xf32> to vector<1x32x1xf32>
    %22 = vector.broadcast %21 : vector<1x32x1xf32> to vector<1x32x128xf32>
    %23 = arith.mulf %22, %0 : vector<1x32x128xf32>
    %cst_17 = arith.constant dense<0.000000e+00> : vector<1x128xf32>
    %24 = vector.multi_reduction <add>, %23, %cst_17 [1] : vector<1x32x128xf32> to vector<1x128xf32>
    %25 = vector.shape_cast %24 : vector<1x128xf32> to vector<1x1x128xf32>
    %c0_18 = arith.constant 0 : index
    %c0_19 = arith.constant 0 : index
    %26 = memref.load %arg7[%c0_18, %c0_19] : memref<1x1xf32, #tpu.memory_space<smem>>
    %27 = vector.broadcast %26 : f32 to vector<1x1x128xf32>
    %28 = arith.addf %25, %27 : vector<1x1x128xf32>
    %29 = arith.negf %28 : vector<1x1x128xf32>
    %30 = math.exp %29 : vector<1x1x128xf32>
    %cst_20 = arith.constant 1.000000e+00 : f32
    %31 = vector.broadcast %cst_20 : f32 to vector<1x1x128xf32>
    %32 = arith.addf %31, %30 : vector<1x1x128xf32>
    %33 = arith.divf %31, %32 : vector<1x1x128xf32>
    %34 = vector.broadcast %19 : vector<1x32x1xf32> to vector<1x32x128xf32>
    %35 = vector.broadcast %33 : vector<1x1x128xf32> to vector<1x32x128xf32>
    %36 = arith.addf %34, %35 : vector<1x32x128xf32>
    %37 = arith.mulf %0, %36 : vector<1x32x128xf32>
    %c0_21 = arith.constant 0 : index
    %c0_22 = arith.constant 0 : index
    %c0_23 = arith.constant 0 : index
    %38 = vector.load %arg8[%c0_21, %c0_22, %c0_23] : memref<1x32x128xf32, #tpu.memory_space<vmem>>, vector<1x32x128xf32>
    tpu.vector_store %arg8[%c0_21, %c0_22, %c0_23], %37 {strides = array<i32>} : memref<1x32x128xf32, #tpu.memory_space<vmem>>, vector<1x32x128xf32>,
    return
  }
  func.func @transform_0(%arg0: i32) -> (i32, i32, i32) {
    %c0_i32 = arith.constant 0 : i32
    %c0_i32_0 = arith.constant 0 : i32
    %c0_i32_1 = arith.constant 0 : i32
    return %arg0, %c0_i32, %c0_i32_0 : i32, i32, i32
  }
  func.func @transform_1(%arg0: i32) -> (i32, i32) {
    %c0_i32 = arith.constant 0 : i32
    %c0_i32_0 = arith.constant 0 : i32
    %c0_i32_1 = arith.constant 0 : i32
    return %c0_i32, %c0_i32_0 : i32, i32
  }
  func.func @transform_2(%arg0: i32) -> (i32, i32) {
    %c0_i32 = arith.constant 0 : i32
    %c0_i32_0 = arith.constant 0 : i32
    %c0_i32_1 = arith.constant 0 : i32
    return %c0_i32, %c0_i32_0 : i32, i32
  }
  func.func @transform_3(%arg0: i32) -> (i32, i32) {
    %c0_i32 = arith.constant 0 : i32
    %c0_i32_0 = arith.constant 0 : i32
    %c0_i32_1 = arith.constant 0 : i32
    return %c0_i32, %c0_i32_0 : i32, i32
  }
  func.func @transform_4(%arg0: i32) -> (i32, i32) {
    %c0_i32 = arith.constant 0 : i32
    %c0_i32_0 = arith.constant 0 : i32
    %c0_i32_1 = arith.constant 0 : i32
    return %c0_i32, %c0_i32_0 : i32, i32
  }
  func.func @transform_5(%arg0: i32) -> (i32, i32) {
    %c0_i32 = arith.constant 0 : i32
    %c0_i32_0 = arith.constant 0 : i32
    %c0_i32_1 = arith.constant 0 : i32
    return %c0_i32, %c0_i32_0 : i32, i32
  }
  func.func @transform_6(%arg0: i32) -> (i32, i32) {
    %c0_i32 = arith.constant 0 : i32
    %c0_i32_0 = arith.constant 0 : i32
    %c0_i32_1 = arith.constant 0 : i32
    return %c0_i32, %c0_i32_0 : i32, i32
  }
  func.func @transform_7(%arg0: i32) -> (i32, i32, i32) {
    %c0_i32 = arith.constant 0 : i32
    %c0_i32_0 = arith.constant 0 : i32
    %c0_i32_1 = arith.constant 0 : i32
    return %arg0, %c0_i32, %c0_i32_0 : i32, i32, i32
  }
}

</mosaic_0001>

<bundles_post_ra>
// kernel: tpu_custom_call.1
= control target key start
LH: loop header
LB: loop body
LE: loop exit
PB: predicated region body
PF: predicated region fallthrough
CT: control target
= control target key end

     0   :  { %s1000_s0 = inlined_call_operand.vmem [shape: f32[2,32,128], index: 0, kind: input, shape index: {}]   ;;  %s1001_s1 = inlined_call_operand.vmem [shape: f32[32,8], index: 1, kind: input, shape index: {}]   ;;  %s1002_s2 = inlined_call_operand.vmem [shape: f32[1,8], index: 2, kind: input, shape index: {}]   ;;  %s1003_s3 = inlined_call_operand.vmem [shape: f32[8,32], index: 3, kind: input, shape index: {}]   ;;  %s1004_s4 = inlined_call_operand.vmem [shape: f32[1,32], index: 4, kind: input, shape index: {}]   ;;  %s1005_s5 = inlined_call_operand.vmem [shape: f32[32,1], index: 5, kind: input, shape index: {}]   ;;  %s1006_s6 = inlined_call_operand.<no memory space> [shape: f32[1,1], index: 6, kind: input, shape index: {}]   ;;  %s1007_s7 = inlined_call_operand.hbm [shape: f32[2,32,128], index: 7, kind: output, shape index: {}]  }
   0x1   :  { %12 = sst [smem:[#allocation2]] %s1006_s6 }
   0x2   :  { %13 = vsyncpa [#allocation4], 0 }
   0x3   :  { %15 = vsyncpa [#allocation4 + $0x1], 0  ;;  %s845_s26 = smov 0   ;;  %s847_s27 = smov 0  }
   0x4   :  { %s849_s28 = smov 0   ;;  %s851_s29 = smov 0  }
   0x5 LB: > { %s866_s6 = sadd.s32 4294967295, %s794_s29   ;;  %s639_s30 = sadd.s32 4294967294, %s794_s29   ;;  %s794_s29 = sphi %s851_s29, %s1013_s29   ;;  %s790_s28 = sphi %s849_s28, %s1012_s28   ;;  %s786_s27 = sphi %s847_s27, %s1011_s27   ;;  %s782_s26 = sphi %s845_s26, %s1010_s26  }
   0x6   : > { %s870_s8 = sadd.s32 1, %s794_s29   ;;  %s180_s9 = sadd.s32 1, %s790_s28 }
   0x7   : > { %s177_s10 = ssub.s32 %s794_s29, %s870_s8  ;;  %p190_p0 = scmp.ne.s32.totalorder %s790_s28, %s786_s27 }
   0x8   : > { %p178_p1 = scmp.eq.s32.totalorder %s177_s10, 0  ;;  %p191_p2 = scmp.eq.s32.totalorder %s866_s6, 1 }
   0x9   : > { %p196_p3 = scmp.ne.s32.totalorder %s786_s27, %s782_s26  ;;  %p197_p4 = scmp.eq.s32.totalorder %s639_s30, 1 }
   0xa   : > { %s881_s11 = scalar_select %p178_p1, %s790_s28, %s180_s9  }
   0xb   : > { %p883_p5 = por %p191_p2, %p190_p0  ;;  %p887_p6 = por %p197_p4, %p196_p3 }
   0xc   : > { %p642_p7 = scmp.ge.s32.totalorder %s794_s29, 1  ;;  %p241_p8 = scmp.lt.s32.totalorder %s794_s29, 3 }
   0xe   : > { %p242_p9 = pnand %p642_p7, %p241_p8 }
   0xf   : > { %p273_p10 = scmp.lt.s32.totalorder (!%p242_p9), %s866_s6, 1  ;;  %s542_s30 = sld [smem:[#allocation2]] (!%p242_p9) }
  0x10   : > { %245 = sbr.rel (%p242_p9) target bundleno = 746 (0x2ea), region = 48  ;;  %s270_s9 = sand.u32 (!%p242_p9), 1, %s786_s27  }
  0x11   : > { %s643_s10 = sshll.u32 (!%p242_p9), %s270_s9, 5  ;;  %s656_s16 = sshll.u32 (!%p242_p9), %s866_s6, 9 }
  0x12   : > { %s957_s19 = scalar_lea.hbm (!%p242_p9), %s1007_s7, %s656_s16  ;;  %s960_s20 = scalar_lea.sflag (!%p242_p9), [#allocation4], %s270_s9 }
  0x15   : > { %s274_s14 = scalar_select %p273_p10, %s866_s6, 1  ;;  %v796_v4 = vmov 0.0   ;;  %v297_v5 = vld [vmem:[%s1001_s1 + $0x18] sm:$0xff]  ;;  %v296_v6 = vld [vmem:[%s1001_s1 + $0x10] sm:$0xff]  ;;  %v295_v7 = vld [vmem:[%s1001_s1 + $0x8] sm:$0xff]  ;;  %vm797_vm0 = vmmov 0   ;;  %v303_v9 = vlaneseq }
  0x16   : > { %664 = vmatprep.subr.mxu0 %v796_v4  ;;  %675 = vmatprep.subr.mxu1 %v796_v4  ;;  %v294_v8 = vld [vmem:[%s1001_s1] sm:$0xff]  ;;  %vm314_vm1 = vcmask 130112   ;;  %vm321_vm2 = vcmask 195712   ;;  %vm328_vm3 = vcmask 261312   ;;  %vm330_vm4 = vcmask 261120   ;;  %v506_v35 = vld [vmem:[%s1005_s5 + $0x8] sm:$0xff] }
  0x17   : > { %s655_s15 = sshll.u32 %s274_s14, 5  ;;  %665 = vmatpush3.msra.mxu0 %v297_v5  ;;  %672 = vmatprep.mubr.msk.f32.mxu0 %vm797_vm0, %v796_v4  ;;  %v304_v10 = vand.u32 127, %v303_v9  ;;  %v306_v11 = vshrl.u32 %v303_v9, 7  ;;  %v404_v34 = vld [vmem:[%s1003_s3] sm:$0xff]  ;;  %v798_v37 = vmov 0   ;;  %v507_v38 = vld [vmem:[%s1005_s5 + $0x10] sm:$0xff] }
  0x18   : > { %s277_s18 = scalar_lea.vmem %s1000_s0, %s655_s15  ;;  %666 = vmatprep.subr.mxu0 %v796_v4  ;;  %677 = vmatprep.mubr.msk.f32.mxu1 %vm797_vm0, %v796_v4  ;;  %v505_v36 = vld [vmem:[%s1005_s5] sm:$0xff]  ;;  %v508_v39 = vld [vmem:[%s1005_s5 + $0x18] sm:$0xff]  ;;  %vm406_vm5 = vcmask 64512   ;;  %s272_s14 = scalar_lea.vmem [#allocation3], %s643_s10 }
  0x19   : > { %v898_v0 = vld [vmem:[%s277_s18] sm:$0xff]  ;;  %v900_v1 = vld [vmem:[%s277_s18 + $0x10] sm:$0xff]  ;;  %v904_v2 = vld [vmem:[%s277_s18 + $0x8] sm:$0xff]  ;;  %667 = vmatpush3.msra.mxu0 %v296_v6  ;;  %v309_v12 = vadd.s32 4294967288, %v304_v10  ;;  %v323_v13 = vadd.s32 4294967272, %v304_v10  ;;  %v316_v15 = vadd.s32 4294967280, %v304_v10  ;;  %v307_v17 = vsub.s32 %v304_v10, %v306_v11  ;;  %676 = vmatpush3.msra.mxu1 %v404_v34 }
  0x1a   : > { %282 = vadd.xlane.f32.xlu0 %v898_v0  ;;  %286 = vadd.xlane.f32.xlu1 %v900_v1  ;;  %v906_v3 = vld [vmem:[%s277_s18 + $0x18] sm:$0xff]  ;;  %v298_v40 = vld [vmem:[%s1002_s2] sm:$0x1]  ;;  %v488_v52 = vsub.s32 0, %v306_v11  ;;  %s577_s15 = sshll.u32 %s272_s14, 4  ;;  %s799_s6 = smov [#allocation3]   ;;  %s952_s15 = int_to_ptr.vmem [resolvable:$true] %s577_s15 }
  0x1b   : > { %668 = vmatprep.subr.mxu0 %v796_v4  ;;  %v312_v19 = vsub.s32 %v309_v12, %v306_v11  ;;  %v326_v20 = vsub.s32 %v323_v13, %v306_v11  ;;  %v319_v21 = vsub.s32 %v316_v15, %v306_v11  ;;  %725 = vset.pattern.permute.xlu1 %v798_v37  ;;  %v405_v45 = vld [vmem:[%s1004_s4] sm:$0x1]  ;;  %v543_v12 = vstv %s542_s30  ;;  %s734_s21 = scalar_lea.vmem %s952_s15, 512  ;;  %s738_s22 = sshll.u32 %s799_s6, 4  ;;  %s739_s22 = int_to_ptr.vmem [resolvable:$false] %s738_s22 }
  0x1c   : > { %669 = vmatpush3.msra.mxu0 %v295_v7  ;;  %724 = vset.pattern.permute.xlu0 %v798_v37  ;;  %p735_p11 = scmp.ne.s32.totalorder %s952_s15, %s734_s21  ;;  %s740_s23 = scalar_lea.vmem %s739_s22, 1024 }
  0x1d   : > { %670 = vmatprep.subr.mxu0 %v796_v4  ;;  %p741_p0 = scmp.lt.s32.totalorder %s952_s15, %s739_s22  ;;  %p742_p1 = scmp.lt.s32.totalorder %s740_s23, %s734_s21 }
  0x1e   : > { %284 = vadd.xlane.f32.xlu0 %v904_v2  ;;  %288 = vadd.xlane.f32.xlu1 %v906_v3  ;;  %p736_p12 = pnand %p735_p11, %p883_p5 }
  0x1f   : > { %671 = vmatpush3.msra.mxu0 %v294_v8  ;;  %p743_p2 = por %p742_p1, %p741_p0 }
  0x20   : > { %p737_p13 = pneg %p736_p12 }
  0x22   : > { %p744_p3 = pnand %p743_p2, %p737_p13 }
  0x2f   : > { %516 = vperm.xlu1 %725, %v506_v35  }
  0x33   : > { %521 = vperm.xlu1 %725, %v507_v38  }
  0x34   : > { %511 = vperm.xlu0 %724, %v505_v36  }
  0x37   : > { %526 = vperm.xlu1 %725, %v508_v39  }
  0xa3   : > { %v283_v14 = vpop.xlane.xlu0 %282  ;;  %v287_v16 = vpop.xlane.xlu1 %286 }
  0xa4   : > { %v290_v18 = vmul.f32 0.0078125, %v283_v14  ;;  %v292_v22 = vmul.f32 0.0078125, %v287_v16 }
  0xa6   : > { %v308_v27 = vrot.slane %v290_v18, %v307_v17  ;;  %v320_v30 = vrot.slane %v292_v22, %v319_v21 }
  0xa7   : > { %v285_v23 = vpop.xlane.xlu0 %284  ;;  %v289_v24 = vpop.xlane.xlu1 %288 }
  0xa8   : > { %v291_v25 = vmul.f32 0.0078125, %v285_v23  ;;  %v293_v26 = vmul.f32 0.0078125, %v289_v24 }
  0xaa   : > { %v313_v28 = vrot.slane %v291_v25, %v312_v19  ;;  %v327_v29 = vrot.slane %v293_v26, %v326_v20 }
  0xab   : > { %v517_v55 = vpop.permute.xlu1 %516 }
  0xac   : > { %v315_v31 = vsel %vm314_vm1, %v313_v28, %v308_v27  ;;  %v530_v58 = vmul.f32 %v517_v55, %v904_v2 }
  0xad   : > { %v322_v32 = vsel %vm321_vm2, %v320_v30, %v315_v31 }
  0xae   : > { %v329_v33 = vsel %vm328_vm3, %v327_v29, %v322_v32 }
  0xaf   : > { %673 = vmatmul.mubr.msk.f32.vlgmr.msra.gmra.mxu0 %vm330_vm4, %v329_v33  ;;  %v512_v56 = vpop.permute.xlu0 %511  ;;  %v522_v57 = vpop.permute.xlu1 %521 }
  0xb0   : > { %v529_v59 = vmul.f32 %v512_v56, %v898_v0  ;;  %v531_v60 = vmul.f32 %v522_v57, %v900_v1 }
  0xb2   : > { %v533_v61 = vadd.f32 %v530_v58, %v529_v59 }
  0xb3   : > { %v527_v62 = vpop.permute.xlu1 %526 }
  0xb4   : > { %v532_v63 = vmul.f32 %v527_v62, %v906_v3  ;;  %v534_v4 = vadd.f32 %v533_v61, %v531_v60 }
  0xb6   : > { %v535_v5 = vadd.f32 %v534_v4, %v532_v63 }
  0xb8   : > { %v536_v6 = vrot.slane %v535_v5, 4 }
  0xba   : > { %v537_v7 = vadd.f32 %v536_v6, %v535_v5 }
  0xbc   : > { %v538_v8 = vrot.slane %v537_v7, 2 }
  0xbe   : > { %v539_v9 = vadd.f32 %v538_v8, %v537_v7 }
  0xc0   : > { %v540_v10 = vrot.slane %v539_v9, 1 }
  0xc2   : > { %v541_v11 = vadd.f32 %v540_v10, %v539_v9 }
  0xc4   : > { %v544_v13 = vadd.f32 %v543_v12, %v541_v11 }
  0xc6   : > { %v649_v14 = vmul.f32 -1.442695, %v544_v13 }
 0x16f   : > { %v399_v41 = vpop.f32.mrf.mxu0 }
 0x170   : > { %v400_v42 = vadd.f32 %v399_v41, %v298_v40 }
 0x171   : > { %v674_v43 = vpop.f32.mrf.mxu0 }
 0x172   : > { %v403_v44 = vmax.f32 %v400_v42, 0.0 }
 0x174   : > { %678 = vmatmul.mubr.msk.f32.vlgmr.msra.gmra.mxu1 %vm406_vm5, %v403_v44 }
 0x234   : > { %v476_v46 = vpop.f32.mrf.mxu1 }
 0x235   : > { %v477_v47 = vadd.f32 %v476_v46, %v405_v45 }
 0x236   : > { %v679_v48 = vpop.f32.mrf.mxu1 }
 0x237   : > { %v648_v49 = vmul.f32 -1.442695, %v477_v47 }
 0x239   : > { %726 = vpow2.f32 %v648_v49 }
 0x246   : > { %v727_v50 = vpop.eup %726 }
 0x247   : > { %v483_v51 = vadd.f32 1.0, %v727_v50 }
 0x249   : > { %728 = vrcp.f32 %v483_v51 }
 0x24a   : > { %730 = vpow2.f32 %v649_v14 }
 0x256   : > { %v729_v53 = vpop.eup %728 }
 0x257   : > { %v489_v54 = vrot.slane %v729_v53, %v488_v52  ;;  %v731_v15 = vpop.eup %730 }
 0x258   : > { %v548_v16 = vadd.f32 1.0, %v731_v15 }
 0x259   : > { %491 = vbcast.lane.b32.xlu1 %v489_v54, 256 }
 0x25a   : > { %732 = vrcp.f32 %v548_v16 }
 0x25d   : > { %495 = vbcast.lane.b32.xlu1 %v489_v54, 264 }
 0x261   : > { %499 = vbcast.lane.b32.xlu1 %v489_v54, 272 }
 0x265   : > { %503 = vbcast.lane.b32.xlu1 %v489_v54, 280 }
 0x267   : > { %v733_v17 = vpop.eup %732 }
 0x2cb   : > { %v492_v18 = vpop.permute.xlu1 %491 }
 0x2cc   : > { %v551_v19 = vadd.f32 %v733_v17, %v492_v18 }
 0x2ce   : > { %v555_v20 = vmul.f32 %v551_v19, %v898_v0 }
 0x2cf   : > { %v496_v21 = vpop.permute.xlu1 %495 }
 0x2d0   : > { %559 = vst [vmem:[%s272_s14] sm:$0xff] %v555_v20  ;;  %v552_v22 = vadd.f32 %v733_v17, %v496_v21 }
 0x2d2   : > { %v556_v23 = vmul.f32 %v552_v22, %v904_v2 }
 0x2d3   : > { %v500_v24 = vpop.permute.xlu1 %499 }
 0x2d4   : > { %560 = vst [vmem:[%s272_s14 + $0x8] sm:$0xff] %v556_v23  ;;  %v553_v25 = vadd.f32 %v733_v17, %v500_v24 }
 0x2d6   : > { %v557_v26 = vmul.f32 %v553_v25, %v900_v1 }
 0x2d7   : > { %v504_v27 = vpop.permute.xlu1 %503 }
 0x2d8   : > { %561 = vst [vmem:[%s272_s14 + $0x10] sm:$0xff] %v557_v26  ;;  %v554_v28 = vadd.f32 %v733_v17, %v504_v27 }
 0x2da   : > { %v558_v0 = vmul.f32 %v554_v28, %v906_v3 }
 0x2dc   : > { %562 = vst [vmem:[%s272_s14 + $0x18] sm:$0xff] %v558_v0 }
 0x2dd   : > { %747 = shalt.err (!%p744_p3)
}
 0x2de   : > { %s748_s24 = scalar_lea.hbm %s957_s19, 512  ;;  %s752_s9 = scalar_lea.hbm %s1007_s7, 1024 }
 0x2df   : > { %p749_p4 = scmp.ne.s32.totalorder %s957_s19, %s748_s24  ;;  %p753_p9 = scmp.lt.s32.totalorder %s957_s19, %s1007_s7 }
 0x2e0   : > { %p754_p10 = scmp.lt.s32.totalorder %s752_s9, %s748_s24 }
 0x2e1   : > { %p750_p7 = pnand %p749_p4, %p883_p5 }
 0x2e2   : > { %p755_p11 = por %p754_p10, %p753_p9 }
 0x2e3   : > { %p751_p8 = pneg %p750_p7 }
 0x2e5   : > { %p756_p12 = pnand %p755_p11, %p751_p8 }
 0x2e7   : > { %759 = shalt.err (!%p756_p12)
}
 0x2e8   : > { %s800_s16 = smov 128   ;;  %s801_s17 = smov 8  }
 0x2e9   : > { %680 = dma.vmem_to_hbm [thread:$0]  (%p883_p5), %s952_s15, 512, %s957_s19, %s960_s20, %s800_s16, %s800_s16, %s801_s17  }
 0x2ea PF: > { %p686_p13 = scmp.ge.s32.totalorder %s794_s29, 2  ;;  %s592_s18 = sand.u32 1, %s782_s26  }
 0x2eb   : > { %s593_s21 = scalar_lea.sflag [#allocation4], %s592_s18 }
 0x2ec   : > { %p683_p0 = pnand %p686_p13, %p887_p6 }
 0x2ee   : > { %p684_p1 = pneg %p683_p0 }
 0x2f0   : > { %777 = dma.done.wait (%p684_p1), %s593_s21, 512  }
 0x2f1   : > { %779 = vsyncadd (%p684_p1), %s593_s21, 4294966784  ;;  %p18_p2 = scmp.ge.s32.totalorder %s870_s8, 4   ;;  %s1010_s26 = smov %s786_s27 }
 0x2f2   : > { %s1011_s27 = smov %s790_s28  ;;  %s1012_s28 = smov %s881_s11 }
 0x2f3   : > { %s1013_s29 = smov %s870_s8  ;;  %20 = sbr.rel (!%p18_p2) target bundleno = 5 (0x5), region = 83 }
 0x2f8   :  { %598 = vsyncpa [#allocation4], 1 }
 0x2f9   :  { %600 = vsyncpa [#allocation4 + $0x1], 1 }

</bundles_post_ra>
